<compile_context>
chip_gen: v7x
topology: tpu7x:2x2x1
jax: 0.10.0
libtpu: 0.0.40
codegen_flags: <defaults>
</compile_context>

<pallas_src>
import functools

import jax
import jax.numpy as jnp
from jax.experimental import pallas as pl
from jax.experimental.pallas import tpu as pltpu

_BN_EPS = 1e-5
_LANE = 128


# ----------------------------- Pallas kernel -------------------------------

def _fused_forward_kernel(x_ref, w1_ref, sh1_ref, sw_ref, ssh_ref,
                          w2_ref, b2_ref, unc_ref, y_ref, *, num_stage):
    """Whole LinearModel forward on one (TM, *) activation tile.

    x_ref   : (TM, F_in)            f32   (cast to bf16 in-kernel)
    w1_ref  : (F_in, H)             bf16  (BN1 folded in)
    sh1_ref : (1, H)                f32
    sw_ref  : (2*num_stage, H, H)   bf16  (per-stage BN folded in)
    ssh_ref : (2*num_stage, 1, H)   f32
    w2_ref  : (H, O_pad)            bf16  (lane-padded final projection)
    b2_ref  : (1, O_pad)            f32
    unc_ref : (TM, H)               bf16
    y_ref   : (TM, O_pad)           bf16
    """
    # y = relu(bn1(w1(x)))  (dropout == identity in eval mode).
    # f32 MXU accumulation, bf16 carry between layers.
    x = x_ref[...].astype(jnp.bfloat16)
    y32 = jnp.dot(x, w1_ref[...], preferred_element_type=jnp.float32)
    y = jnp.maximum(y32 + sh1_ref[...], 0.0).astype(jnp.bfloat16)

    # Residual stages (static unrolled loop; weights stay in VMEM).
    for s in range(num_stage):
        h32 = jnp.dot(y, sw_ref[2 * s], preferred_element_type=jnp.float32)
        h = jnp.maximum(h32 + ssh_ref[2 * s], 0.0).astype(jnp.bfloat16)
        h32 = jnp.dot(h, sw_ref[2 * s + 1], preferred_element_type=jnp.float32)
        h = jnp.maximum(h32 + ssh_ref[2 * s + 1], 0.0).astype(jnp.bfloat16)
        y = y + h                      # out = stage_input + h   (bf16 carry)

    # unc_out: reuse the same bf16 value that also feeds the final matmul.
    unc_ref[...] = y

    # Final plain linear, written to a lane-dense padded bf16 slab.
    out = jnp.dot(y, w2_ref[...], preferred_element_type=jnp.float32)
    y_ref[...] = (out + b2_ref[...]).astype(y_ref.dtype)


# ------------------------------ wrapper -------------------------------------

def linear_model_forward(x, fused):
    """Mirrors LinearModel.forward: returns (y, unc_out) in bfloat16."""
    M, F_in = x.shape
    H = fused["w1"].shape[1]
    L = fused["stage_w"].shape[0]
    num_stage = L // 2
    O_pad = fused["w2"].shape[1]
    output_size = fused["output_size"]

    # Tile the batch axis.  TM=256 keeps the MXU deep on v6e while producing
    # >=2 grid steps for big batches (pipeline overlap / v7x core sharding).
    TM = M if M <= 256 else 256
    grid = (pl.cdiv(M, TM),)    # Pallas masks the partial last tile.

    flops = 2 * M * (F_in * H + L * H * H + H * O_pad)
    bytes_accessed = (M * F_in * 4                                     # x (f32 in)
                      + (F_in * H + L * H * H + H * O_pad) * 2        # bf16 weights
                      + (L + 1) * H * 4 + O_pad * 4                   # f32 shifts
                      + M * H * 2 + M * O_pad * 2)                    # bf16 outputs

    kernel = functools.partial(_fused_forward_kernel, num_stage=num_stage)
    unc_out, y_pad = pl.pallas_call(
        kernel,
        out_shape=(jax.ShapeDtypeStruct((M, H), jnp.bfloat16),
                   jax.ShapeDtypeStruct((M, O_pad), jnp.bfloat16)),
        grid=grid,
        in_specs=[
            pl.BlockSpec((TM, F_in), lambda i: (i, 0)),       # x tile (f32)
            pl.BlockSpec((F_in, H), lambda i: (0, 0)),        # w1 (resident)
            pl.BlockSpec((1, H), lambda i: (0, 0)),           # shift1
            pl.BlockSpec((L, H, H), lambda i: (0, 0, 0)),     # stage weights
            pl.BlockSpec((L, 1, H), lambda i: (0, 0, 0)),     # stage shifts
            pl.BlockSpec((H, O_pad), lambda i: (0, 0)),       # w2 (padded)
            pl.BlockSpec((1, O_pad), lambda i: (0, 0)),       # b2 (padded)
        ],
        out_specs=(pl.BlockSpec((TM, H), lambda i: (i, 0)),
                   pl.BlockSpec((TM, O_pad), lambda i: (i, 0))),
        compiler_params=pltpu.CompilerParams(
            dimension_semantics=("parallel",),
            vmem_limit_bytes=32 * 1024 * 1024),
        cost_estimate=pl.CostEstimate(flops=flops, transcendentals=0,
                                      bytes_accessed=bytes_accessed),
    )(x, fused["w1"], fused["shift1"],
      fused["stage_w"], fused["stage_shift"], fused["w2"], fused["b2"])

    y = y_pad[:, :output_size]
    return y, unc_out


# --------------------------- parameter helpers -------------------------------

def _fold_bn(w, b, gamma, beta, mean, var):
    """Fold Linear(b) + BatchNorm(inference) into (W', shift')."""
    scale = gamma / jnp.sqrt(var + _BN_EPS)
    w_folded = w * scale[None, :]
    shift = (b - mean) * scale + beta
    return w_folded, shift


def init_raw_params(key, input_size, output_size, linear_size, num_stage):
    """Deterministic synthetic parameters (weights stored as (in, out))."""
    def lin(k, fan_in, fan_out):
        kw, kb = jax.random.split(k)
        w = jax.random.normal(kw, (fan_in, fan_out), jnp.float32) * 0.05
        b = jax.random.normal(kb, (fan_out,), jnp.float32) * 0.05
        return w, b

    def bn(k, n):
        k1, k2, k3, k4 = jax.random.split(k, 4)
        gamma = 1.0 + 0.1 * jax.random.normal(k1, (n,), jnp.float32)
        beta = 0.1 * jax.random.normal(k2, (n,), jnp.float32)
        mean = 0.1 * jax.random.normal(k3, (n,), jnp.float32)
        var = 1.0 + 0.1 * jax.random.uniform(k4, (n,), jnp.float32)
        return gamma, beta, mean, var

    keys = jax.random.split(key, 4 + 4 * num_stage)
    raw = {}
    raw["w1"], raw["b1"] = lin(keys[0], input_size, linear_size)
    raw["bn1"] = bn(keys[1], linear_size)
    raw["stages"] = []
    for s in range(num_stage):
        k0, k1, k2, k3 = keys[2 + 4 * s: 6 + 4 * s]
        sw1, sb1 = lin(k0, linear_size, linear_size)
        bn1 = bn(k1, linear_size)
        sw2, sb2 = lin(k2, linear_size, linear_size)
        bn2 = bn(k3, linear_size)
        raw["stages"].append(dict(w1=sw1, b1=sb1, bn1=bn1,
                                  w2=sw2, b2=sb2, bn2=bn2))
    raw["w2"], raw["b2"] = lin(keys[2 + 4 * num_stage],
                               linear_size, output_size)
    return raw


def prepare_fused_params(raw, output_size):
    """Fold BN, stack stage weights, cast MXU operands to bf16, lane-pad w2."""
    w1, sh1 = _fold_bn(raw["w1"], raw["b1"], *raw["bn1"])
    H = w1.shape[1]

    stage_ws, stage_shs = [], []
    for sp in raw["stages"]:
        wa, sa = _fold_bn(sp["w1"], sp["b1"], *sp["bn1"])
        wb, sb = _fold_bn(sp["w2"], sp["b2"], *sp["bn2"])
        stage_ws += [wa, wb]
        stage_shs += [sa, sb]
    stage_w = jnp.stack(stage_ws, axis=0)                         # (L, H, H)
    stage_shift = jnp.stack(stage_shs, axis=0).reshape(-1, 1, H)  # (L, 1, H)

    o_pad = max(_LANE, ((output_size + _LANE - 1) // _LANE) * _LANE)
    w2 = jnp.pad(raw["w2"], ((0, 0), (0, o_pad - output_size)))
    b2 = jnp.pad(raw["b2"], (0, o_pad - output_size)).reshape(1, o_pad)

    return dict(
        w1=w1.astype(jnp.bfloat16),
        shift1=sh1.reshape(1, H).astype(jnp.float32),
        stage_w=stage_w.astype(jnp.bfloat16),
        stage_shift=stage_shift.astype(jnp.float32),
        w2=w2.astype(jnp.bfloat16),
        b2=b2.astype(jnp.float32),
        output_size=output_size,
    )


# --------------------------- pure-JAX reference ------------------------------

def _reference_forward(x, fused):
    """Plain-XLA reference emulating the kernel's numerics:
    bf16 weights + bf16 activation carry, f32 matmul accumulation."""
    bf = jnp.bfloat16
    f32 = jnp.float32
    num_stage = fused["stage_w"].shape[0] // 2

    def mm(a_bf, w_bf):                       # f32-accumulated bf16 matmul
        return jnp.dot(a_bf.astype(f32), w_bf.astype(f32))

    y = jnp.maximum(mm(x.astype(bf), fused["w1"]) + fused["shift1"],
                    0.0).astype(bf)
    for s in range(num_stage):
        h = jnp.maximum(mm(y, fused["stage_w"][2 * s])
                        + fused["stage_shift"][2 * s], 0.0).astype(bf)
        h = jnp.maximum(mm(h, fused["stage_w"][2 * s + 1])
                        + fused["stage_shift"][2 * s + 1], 0.0).astype(bf)
        y = (y + h).astype(bf)
    unc = y
    out = (mm(y, fused["w2"]) + fused["b2"]).astype(bf)
    return out[:, :fused["output_size"]], unc


# --------------------------------- main ---------------------------------------

if __name__ == "__main__":
    INPUT_SIZE = 32
    OUTPUT_SIZE = 16
    LINEAR_SIZE = 128
    NUM_STAGE = 2
    BATCH = 8

    key = jax.random.PRNGKey(0)
    kx, kp = jax.random.split(key)
    x = jax.random.normal(kx, (BATCH, INPUT_SIZE), jnp.float32)
    raw = init_raw_params(kp, INPUT_SIZE, OUTPUT_SIZE, LINEAR_SIZE, NUM_STAGE)
    fused = prepare_fused_params(raw, OUTPUT_SIZE)

    y, unc_out = linear_model_forward(x, fused)
    jax.block_until_ready((y, unc_out))

    assert y.shape == (BATCH, OUTPUT_SIZE)
    assert unc_out.shape == (BATCH, LINEAR_SIZE)
    assert y.dtype == jnp.bfloat16 and unc_out.dtype == jnp.bfloat16
    assert jnp.all(jnp.isfinite(y.astype(jnp.float32)))
    assert jnp.all(jnp.isfinite(unc_out.astype(jnp.float32)))

    # Correctness vs. quantization-matched plain-XLA reference.
    y_ref, unc_ref = _reference_forward(x, fused)
    assert jnp.allclose(y.astype(jnp.float32), y_ref.astype(jnp.float32),
                        atol=2e-2, rtol=2e-2)
    assert jnp.allclose(unc_out.astype(jnp.float32),
                        unc_ref.astype(jnp.float32), atol=2e-2, rtol=2e-2)

    print("KERNEL_OK")
</pallas_src>

<mosaic_0001>
module attributes {stable_mosaic.version = 11 : i64} {
  func.func @_fused_forward_kernel(%arg0: i32, %arg1: memref<8x32xf32, #tpu.memory_space<vmem>>, %arg2: memref<32x128xbf16, #tpu.memory_space<vmem>>, %arg3: memref<1x128xf32, #tpu.memory_space<vmem>>, %arg4: memref<4x128x128xbf16, #tpu.memory_space<vmem>>, %arg5: memref<4x1x128xf32, #tpu.memory_space<vmem>>, %arg6: memref<128x128xbf16, #tpu.memory_space<vmem>>, %arg7: memref<1x128xf32, #tpu.memory_space<vmem>>, %arg8: memref<8x128xbf16, #tpu.memory_space<vmem>>, %arg9: memref<8x128xbf16, #tpu.memory_space<vmem>>) attributes {dimension_semantics = [#tpu.dimension_semantics<parallel>], iteration_bounds = array<i64: 1>, scalar_prefetch = 0 : i64, scratch_operands = 0 : i64, tpu.core_type = #tpu.core_type<tc>, window_params = [{transform_indices = @transform_0, window_bounds = array<i64: 8, 32>}, {pipeline_mode = #tpu.pipeline_mode<synchronous>, transform_indices = @transform_1, window_bounds = array<i64: 32, 128>}, {pipeline_mode = #tpu.pipeline_mode<synchronous>, transform_indices = @transform_2, window_bounds = array<i64: 1, 128>}, {pipeline_mode = #tpu.pipeline_mode<synchronous>, transform_indices = @transform_3, window_bounds = array<i64: 4, 128, 128>}, {pipeline_mode = #tpu.pipeline_mode<synchronous>, transform_indices = @transform_4, window_bounds = array<i64: 4, 1, 128>}, {pipeline_mode = #tpu.pipeline_mode<synchronous>, transform_indices = @transform_5, window_bounds = array<i64: 128, 128>}, {pipeline_mode = #tpu.pipeline_mode<synchronous>, transform_indices = @transform_6, window_bounds = array<i64: 1, 128>}, {transform_indices = @transform_7, window_bounds = array<i64: 8, 128>}, {transform_indices = @transform_8, window_bounds = array<i64: 8, 128>}]} {
    %c0 = arith.constant 0 : index
    %c0_0 = arith.constant 0 : index
    %0 = vector.load %arg1[%c0, %c0_0] : memref<8x32xf32, #tpu.memory_space<vmem>>, vector<8x32xf32>
    %1 = arith.truncf %0 : vector<8x32xf32> to vector<8x32xbf16>
    %c0_1 = arith.constant 0 : index
    %c0_2 = arith.constant 0 : index
    %2 = vector.load %arg2[%c0_1, %c0_2] : memref<32x128xbf16, #tpu.memory_space<vmem>>, vector<32x128xbf16>
    %cst = arith.constant dense<0.000000e+00> : vector<8x128xf32>
    %3 = tpu.matmul %1, %2, %cst {dimension_numbers = #tpu.dot_dimension_numbers<[1], [0], [0], [1], [0, 0, 1, 1], [], []>} : vector<8x32xbf16>, vector<32x128xbf16>, vector<8x128xf32> -> vector<8x128xf32>
    %c0_3 = arith.constant 0 : index
    %c0_4 = arith.constant 0 : index
    %4 = vector.load %arg3[%c0_3, %c0_4] : memref<1x128xf32, #tpu.memory_space<vmem>>, vector<1x128xf32>
    %5 = vector.broadcast %4 : vector<1x128xf32> to vector<8x128xf32>
    %6 = arith.addf %3, %5 : vector<8x128xf32>
    %cst_5 = arith.constant 0.000000e+00 : f32
    %7 = vector.broadcast %cst_5 : f32 to vector<8x128xf32>
    %8 = arith.maximumf %6, %7 : vector<8x128xf32>
    %9 = arith.truncf %8 : vector<8x128xf32> to vector<8x128xbf16>
    %c0_6 = arith.constant 0 : index
    %c0_7 = arith.constant 0 : index
    %c0_8 = arith.constant 0 : index
    %10 = vector.load %arg4[%c0_6, %c0_7, %c0_8] : memref<4x128x128xbf16, #tpu.memory_space<vmem>>, vector<1x128x128xbf16>
    %11 = vector.shape_cast %10 : vector<1x128x128xbf16> to vector<128x128xbf16>
    %cst_9 = arith.constant dense<0.000000e+00> : vector<8x128xf32>
    %12 = tpu.matmul %9, %11, %cst_9 {dimension_numbers = #tpu.dot_dimension_numbers<[1], [0], [0], [1], [0, 0, 1, 1], [], []>} : vector<8x128xbf16>, vector<128x128xbf16>, vector<8x128xf32> -> vector<8x128xf32>
    %c0_10 = arith.constant 0 : index
    %c0_11 = arith.constant 0 : index
    %c0_12 = arith.constant 0 : index
    %13 = vector.load %arg5[%c0_10, %c0_11, %c0_12] : memref<4x1x128xf32, #tpu.memory_space<vmem>>, vector<1x1x128xf32>
    %14 = vector.shape_cast %13 : vector<1x1x128xf32> to vector<1x128xf32>
    %15 = vector.broadcast %14 : vector<1x128xf32> to vector<8x128xf32>
    %16 = arith.addf %12, %15 : vector<8x128xf32>
    %cst_13 = arith.constant 0.000000e+00 : f32
    %17 = vector.broadcast %cst_13 : f32 to vector<8x128xf32>
    %18 = arith.maximumf %16, %17 : vector<8x128xf32>
    %19 = arith.truncf %18 : vector<8x128xf32> to vector<8x128xbf16>
    %c1 = arith.constant 1 : index
    %c0_14 = arith.constant 0 : index
    %c0_15 = arith.constant 0 : index
    %20 = vector.load %arg4[%c1, %c0_14, %c0_15] : memref<4x128x128xbf16, #tpu.memory_space<vmem>>, vector<1x128x128xbf16>
    %21 = vector.shape_cast %20 : vector<1x128x128xbf16> to vector<128x128xbf16>
    %cst_16 = arith.constant dense<0.000000e+00> : vector<8x128xf32>
    %22 = tpu.matmul %19, %21, %cst_16 {dimension_numbers = #tpu.dot_dimension_numbers<[1], [0], [0], [1], [0, 0, 1, 1], [], []>} : vector<8x128xbf16>, vector<128x128xbf16>, vector<8x128xf32> -> vector<8x128xf32>
    %c1_17 = arith.constant 1 : index
    %c0_18 = arith.constant 0 : index
    %c0_19 = arith.constant 0 : index
    %23 = vector.load %arg5[%c1_17, %c0_18, %c0_19] : memref<4x1x128xf32, #tpu.memory_space<vmem>>, vector<1x1x128xf32>
    %24 = vector.shape_cast %23 : vector<1x1x128xf32> to vector<1x128xf32>
    %25 = vector.broadcast %24 : vector<1x128xf32> to vector<8x128xf32>
    %26 = arith.addf %22, %25 : vector<8x128xf32>
    %cst_20 = arith.constant 0.000000e+00 : f32
    %27 = vector.broadcast %cst_20 : f32 to vector<8x128xf32>
    %28 = arith.maximumf %26, %27 : vector<8x128xf32>
    %29 = arith.truncf %28 : vector<8x128xf32> to vector<8x128xbf16>
    %30 = arith.addf %9, %29 : vector<8x128xbf16>
    %c2 = arith.constant 2 : index
    %c0_21 = arith.constant 0 : index
    %c0_22 = arith.constant 0 : index
    %31 = vector.load %arg4[%c2, %c0_21, %c0_22] : memref<4x128x128xbf16, #tpu.memory_space<vmem>>, vector<1x128x128xbf16>
    %32 = vector.shape_cast %31 : vector<1x128x128xbf16> to vector<128x128xbf16>
    %cst_23 = arith.constant dense<0.000000e+00> : vector<8x128xf32>
    %33 = tpu.matmul %30, %32, %cst_23 {dimension_numbers = #tpu.dot_dimension_numbers<[1], [0], [0], [1], [0, 0, 1, 1], [], []>} : vector<8x128xbf16>, vector<128x128xbf16>, vector<8x128xf32> -> vector<8x128xf32>
    %c2_24 = arith.constant 2 : index
    %c0_25 = arith.constant 0 : index
    %c0_26 = arith.constant 0 : index
    %34 = vector.load %arg5[%c2_24, %c0_25, %c0_26] : memref<4x1x128xf32, #tpu.memory_space<vmem>>, vector<1x1x128xf32>
    %35 = vector.shape_cast %34 : vector<1x1x128xf32> to vector<1x128xf32>
    %36 = vector.broadcast %35 : vector<1x128xf32> to vector<8x128xf32>
    %37 = arith.addf %33, %36 : vector<8x128xf32>
    %cst_27 = arith.constant 0.000000e+00 : f32
    %38 = vector.broadcast %cst_27 : f32 to vector<8x128xf32>
    %39 = arith.maximumf %37, %38 : vector<8x128xf32>
    %40 = arith.truncf %39 : vector<8x128xf32> to vector<8x128xbf16>
    %c3 = arith.constant 3 : index
    %c0_28 = arith.constant 0 : index
    %c0_29 = arith.constant 0 : index
    %41 = vector.load %arg4[%c3, %c0_28, %c0_29] : memref<4x128x128xbf16, #tpu.memory_space<vmem>>, vector<1x128x128xbf16>
    %42 = vector.shape_cast %41 : vector<1x128x128xbf16> to vector<128x128xbf16>
    %cst_30 = arith.constant dense<0.000000e+00> : vector<8x128xf32>
    %43 = tpu.matmul %40, %42, %cst_30 {dimension_numbers = #tpu.dot_dimension_numbers<[1], [0], [0], [1], [0, 0, 1, 1], [], []>} : vector<8x128xbf16>, vector<128x128xbf16>, vector<8x128xf32> -> vector<8x128xf32>
    %c3_31 = arith.constant 3 : index
    %c0_32 = arith.constant 0 : index
    %c0_33 = arith.constant 0 : index
    %44 = vector.load %arg5[%c3_31, %c0_32, %c0_33] : memref<4x1x128xf32, #tpu.memory_space<vmem>>, vector<1x1x128xf32>
    %45 = vector.shape_cast %44 : vector<1x1x128xf32> to vector<1x128xf32>
    %46 = vector.broadcast %45 : vector<1x128xf32> to vector<8x128xf32>
    %47 = arith.addf %43, %46 : vector<8x128xf32>
    %cst_34 = arith.constant 0.000000e+00 : f32
    %48 = vector.broadcast %cst_34 : f32 to vector<8x128xf32>
    %49 = arith.maximumf %47, %48 : vector<8x128xf32>
    %50 = arith.truncf %49 : vector<8x128xf32> to vector<8x128xbf16>
    %51 = arith.addf %30, %50 : vector<8x128xbf16>
    %c0_35 = arith.constant 0 : index
    %c0_36 = arith.constant 0 : index
    %52 = vector.load %arg8[%c0_35, %c0_36] : memref<8x128xbf16, #tpu.memory_space<vmem>>, vector<8x128xbf16>
    tpu.vector_store %arg8[%c0_35, %c0_36], %51 {strides = array<i32>} : memref<8x128xbf16, #tpu.memory_space<vmem>>, vector<8x128xbf16>,
    %c0_37 = arith.constant 0 : index
    %c0_38 = arith.constant 0 : index
    %53 = vector.load %arg6[%c0_37, %c0_38] : memref<128x128xbf16, #tpu.memory_space<vmem>>, vector<128x128xbf16>
    %cst_39 = arith.constant dense<0.000000e+00> : vector<8x128xf32>
    %54 = tpu.matmul %51, %53, %cst_39 {dimension_numbers = #tpu.dot_dimension_numbers<[1], [0], [0], [1], [0, 0, 1, 1], [], []>} : vector<8x128xbf16>, vector<128x128xbf16>, vector<8x128xf32> -> vector<8x128xf32>
    %c0_40 = arith.constant 0 : index
    %c0_41 = arith.constant 0 : index
    %55 = vector.load %arg7[%c0_40, %c0_41] : memref<1x128xf32, #tpu.memory_space<vmem>>, vector<1x128xf32>
    %56 = vector.broadcast %55 : vector<1x128xf32> to vector<8x128xf32>
    %57 = arith.addf %54, %56 : vector<8x128xf32>
    %58 = arith.truncf %57 : vector<8x128xf32> to vector<8x128xbf16>
    %c0_42 = arith.constant 0 : index
    %c0_43 = arith.constant 0 : index
    %59 = vector.load %arg9[%c0_42, %c0_43] : memref<8x128xbf16, #tpu.memory_space<vmem>>, vector<8x128xbf16>
    tpu.vector_store %arg9[%c0_42, %c0_43], %58 {strides = array<i32>} : memref<8x128xbf16, #tpu.memory_space<vmem>>, vector<8x128xbf16>,
    return
  }
  func.func @transform_0(%arg0: i32) -> (i32, i32) {
    %c0_i32 = arith.constant 0 : i32
    %c0_i32_0 = arith.constant 0 : i32
    return %arg0, %c0_i32 : i32, i32
  }
  func.func @transform_1(%arg0: i32) -> (i32, i32) {
    %c0_i32 = arith.constant 0 : i32
    %c0_i32_0 = arith.constant 0 : i32
    %c0_i32_1 = arith.constant 0 : i32
    return %c0_i32, %c0_i32_0 : i32, i32
  }
  func.func @transform_2(%arg0: i32) -> (i32, i32) {
    %c0_i32 = arith.constant 0 : i32
    %c0_i32_0 = arith.constant 0 : i32
    %c0_i32_1 = arith.constant 0 : i32
    return %c0_i32, %c0_i32_0 : i32, i32
  }
  func.func @transform_3(%arg0: i32) -> (i32, i32, i32) {
    %c0_i32 = arith.constant 0 : i32
    %c0_i32_0 = arith.constant 0 : i32
    %c0_i32_1 = arith.constant 0 : i32
    %c0_i32_2 = arith.constant 0 : i32
    return %c0_i32, %c0_i32_0, %c0_i32_1 : i32, i32, i32
  }
  func.func @transform_4(%arg0: i32) -> (i32, i32, i32) {
    %c0_i32 = arith.constant 0 : i32
    %c0_i32_0 = arith.constant 0 : i32
    %c0_i32_1 = arith.constant 0 : i32
    %c0_i32_2 = arith.constant 0 : i32
    return %c0_i32, %c0_i32_0, %c0_i32_1 : i32, i32, i32
  }
  func.func @transform_5(%arg0: i32) -> (i32, i32) {
    %c0_i32 = arith.constant 0 : i32
    %c0_i32_0 = arith.constant 0 : i32
    %c0_i32_1 = arith.constant 0 : i32
    return %c0_i32, %c0_i32_0 : i32, i32
  }
  func.func @transform_6(%arg0: i32) -> (i32, i32) {
    %c0_i32 = arith.constant 0 : i32
    %c0_i32_0 = arith.constant 0 : i32
    %c0_i32_1 = arith.constant 0 : i32
    return %c0_i32, %c0_i32_0 : i32, i32
  }
  func.func @transform_7(%arg0: i32) -> (i32, i32) {
    %c0_i32 = arith.constant 0 : i32
    %c0_i32_0 = arith.constant 0 : i32
    return %arg0, %c0_i32 : i32, i32
  }
  func.func @transform_8(%arg0: i32) -> (i32, i32) {
    %c0_i32 = arith.constant 0 : i32
    %c0_i32_0 = arith.constant 0 : i32
    return %arg0, %c0_i32 : i32, i32
  }
}

</mosaic_0001>

<bundles_post_ra>
// kernel: tpu_custom_call.1
= control target key start
LH: loop header
LB: loop body
LE: loop exit
PB: predicated region body
PF: predicated region fallthrough
CT: control target
= control target key end

     0   :  { %14 = vsyncpa [#allocation3], 0  ;;  %s1374_s0 = inlined_call_operand.hbm [shape: f32[8,32], index: 0, kind: input, shape index: {}]   ;;  %s1375_s1 = inlined_call_operand.hbm [shape: bf16[32,128], index: 1, kind: input, shape index: {}]   ;;  %s1376_s2 = inlined_call_operand.vmem [shape: f32[1,128], index: 2, kind: input, shape index: {}]   ;;  %s1377_s3 = inlined_call_operand.hbm [shape: bf16[4,128,128], index: 3, kind: input, shape index: {}]   ;;  %s1378_s4 = inlined_call_operand.vmem [shape: f32[4,1,128], index: 4, kind: input, shape index: {}]   ;;  %s1379_s5 = inlined_call_operand.hbm [shape: bf16[128,128], index: 5, kind: input, shape index: {}]   ;;  %s1380_s6 = inlined_call_operand.vmem [shape: f32[1,128], index: 6, kind: input, shape index: {}]   ;;  %s1381_s7 = inlined_call_operand.hbm [shape: bf16[8,128], index: 7, kind: output, shape index: {0}]   ;;  %s1382_s8 = inlined_call_operand.hbm [shape: bf16[8,128], index: 8, kind: output, shape index: {1}]  }
   0x1   :  { %15 = vsyncpa [#allocation6], 0 }
   0x2   :  { %16 = vsyncpa [#allocation9], 0 }
   0x3   :  { %17 = vsyncpa [#allocation4], 0 }
   0x4   :  { %18 = vsyncpa [#allocation12], 0  ;;  %s1162_s27 = smov [#allocation5]   ;;  %s1020_s9 = scalar_lea.hbm %s1375_s1, 256 }
   0x5   :  { %s34_s28 = sshll.u32 %s1162_s27, 4  ;;  %p1021_p0 = scmp.ne.s32.totalorder %s1375_s1, %s1020_s9  ;;  %s35_s28 = int_to_ptr.vmem [resolvable:$true] %s34_s28 }
   0x6   :  { %p1024_p1 = scmp.lt.u32.totalorder %s1020_s9, %s1375_s1 }
   0x8   :  { %p1026_p2 = pnand %p1024_p1, %p1021_p0 }
   0xa   :  { %1029 = shalt.err (!%p1026_p2)
}
   0xb   :  { %s1030_s14 = scalar_lea.vmem %s35_s28, 256  ;;  %p1035_p4 = scmp.lt.s32.totalorder %s35_s28, %s35_s28 }
   0xc   :  { %p1031_p3 = scmp.ne.s32.totalorder %s35_s28, %s1030_s14  ;;  %p1036_p5 = scmp.lt.s32.totalorder %s1030_s14, %s1030_s14 }
   0xe   :  { %p1037_p6 = por %p1036_p5, %p1035_p4 }
  0x10   :  { %p1038_p7 = pnand %p1037_p6, %p1031_p3 }
  0x12   :  { %1041 = shalt.err (!%p1038_p7)
}
  0x13   :  { %s1163_s15 = smov 64   ;;  %s1164_s16 = smov 4  }
  0x14   :  { %40 = dma.hbm_to_vmem [thread:$0]  %s1375_s1, 256, %s35_s28, [#allocation6], %s1163_s15, %s1163_s15, %s1164_s16  }
  0x15   :  { %s1165_s19 = smov [#allocation2]   ;;  %s1166_s21 = smov [#allocation7]  }
  0x16   :  { %s25_s20 = sshll.u32 %s1165_s19, 4  ;;  %s48_s22 = sshll.u32 %s1166_s21, 4  ;;  %s26_s20 = int_to_ptr.vmem [resolvable:$true] %s25_s20  ;;  %s49_s22 = int_to_ptr.vmem [resolvable:$true] %s48_s22 }
  0x17   :  { %s1042_s25 = scalar_lea.hbm %s1374_s0, 128 }
  0x18   :  { %p1043_p8 = scmp.ne.s32.totalorder %s1374_s0, %s1042_s25  ;;  %p1046_p9 = scmp.lt.u32.totalorder %s1042_s25, %s1374_s0 }
  0x1a   :  { %p1048_p10 = pnand %p1046_p9, %p1043_p8 }
  0x1c   :  { %1051 = shalt.err (!%p1048_p10)
}
  0x1d   :  { %s1052_s1 = scalar_lea.vmem %s26_s20, 128  ;;  %p1057_p12 = scmp.lt.s32.totalorder %s26_s20, %s26_s20 }
  0x1e   :  { %p1053_p11 = scmp.ne.s32.totalorder %s26_s20, %s1052_s1  ;;  %p1058_p13 = scmp.lt.s32.totalorder %s1052_s1, %s1052_s1 }
  0x20   :  { %p1059_p0 = por %p1058_p13, %p1057_p12 }
  0x22   :  { %p1060_p1 = pnand %p1059_p0, %p1053_p11 }
  0x24   :  { %1063 = shalt.err (!%p1060_p1)
}
  0x25   :  { %28 = dma.hbm_to_vmem [thread:$0]  %s1374_s0, 128, %s26_s20, [#allocation3]  }
  0x26   :  { %s1064_s12 = scalar_lea.hbm %s1377_s3, 4096 }
  0x27   :  { %p1065_p2 = scmp.ne.s32.totalorder %s1377_s3, %s1064_s12  ;;  %p1068_p3 = scmp.lt.u32.totalorder %s1064_s12, %s1377_s3 }
  0x29   :  { %p1070_p4 = pnand %p1068_p3, %p1065_p2 }
  0x2b   :  { %1073 = shalt.err (!%p1070_p4)
}
  0x2c   :  { %s1074_s19 = scalar_lea.vmem %s49_s22, 4096  ;;  %p1079_p6 = scmp.lt.s32.totalorder %s49_s22, %s49_s22 }
  0x2d   :  { %p1075_p5 = scmp.ne.s32.totalorder %s49_s22, %s1074_s19  ;;  %p1080_p7 = scmp.lt.s32.totalorder %s1074_s19, %s1074_s19 }
  0x2f   :  { %p1081_p8 = por %p1080_p7, %p1079_p6 }
  0x31   :  { %p1082_p9 = pnand %p1081_p8, %p1075_p5 }
  0x33   :  { %1085 = shalt.err (!%p1082_p9)
}
  0x34   :  { %54 = dma.hbm_to_vmem [thread:$0]  %s1377_s3, 4096, %s49_s22, [#allocation6], %s1163_s15, %s1163_s15, %s1164_s16  }
  0x35   :  { %s1167_s21 = smov [#allocation8]   ;;  %s1086_s26 = scalar_lea.hbm %s1379_s5, 1024 }
  0x36   :  { %s62_s23 = sshll.u32 %s1167_s21, 4  ;;  %p1087_p10 = scmp.ne.s32.totalorder %s1379_s5, %s1086_s26  ;;  %s63_s23 = int_to_ptr.vmem [resolvable:$true] %s62_s23 }
  0x37   :  { %p1090_p11 = scmp.lt.u32.totalorder %s1086_s26, %s1379_s5 }
  0x39   :  { %p1092_p12 = pnand %p1090_p11, %p1087_p10 }
  0x3b   :  { %1095 = shalt.err (!%p1092_p12)
}
  0x3c   :  { %s1096_s28 = scalar_lea.vmem %s63_s23, 1024  ;;  %p1101_p0 = scmp.lt.s32.totalorder %s63_s23, %s63_s23 }
  0x3d   :  { %p1097_p13 = scmp.ne.s32.totalorder %s63_s23, %s1096_s28  ;;  %p1102_p1 = scmp.lt.s32.totalorder %s1096_s28, %s1096_s28 }
  0x3f   :  { %p1103_p2 = por %p1102_p1, %p1101_p0 }
  0x41   :  { %p1104_p3 = pnand %p1103_p2, %p1097_p13 }
  0x43   :  { %1107 = shalt.err (!%p1104_p3)
}
  0x44   :  { %68 = dma.hbm_to_vmem [thread:$0]  %s1379_s5, 1024, %s63_s23, [#allocation9], %s1163_s15, %s1163_s15, %s1164_s16  }
  0x45   :  { %1152 = dma.done.wait [#allocation3], 128  }
  0x46   :  { %1153 = vsyncadd [#allocation3], 4294967168 }
  0x47   :  { %1154 = dma.done.wait [#allocation6], 4352  }
  0x48   :  { %1155 = vsyncadd [#allocation6], 4294962944 }
  0x49   :  { %1156 = dma.done.wait [#allocation9], 1024  }
  0x4a   :  { %1157 = vsyncadd [#allocation9], 4294966272  ;;  %v1168_v0 = vmov 0.0   ;;  %vm1169_vm0 = vmmov 0   ;;  %v978_v1 = vld [vmem:[#allocation5] sm:$0xff]   ;;  %v979_v2 = vld [vmem:[#allocation5 + $0x8] sm:$0xff]  }
  0x4b   :  { %860 = vmatprep.subr.bf16.mxu0 %v1168_v0  ;;  %864 = vmatprep.mubr.msk.bf16.mxu0 %vm1169_vm0, %v1168_v0  ;;  %v84_v3 = vld [vmem:[#allocation2] sm:$0xff]  ;;  %v980_v4 = vld [vmem:[#allocation7] sm:$0xff]   ;;  %vm109_vm1 = vcmask 261120   ;;  %v982_v7 = vld [vmem:[#allocation7 + $0x10] sm:$0xff]   ;;  %s1170_s17 = smov [#allocation10]  }
  0x4c   :  { %868 = vmatprep.subr.bf16.mxu1 %v1168_v0  ;;  %884 = vmatprep.mubr.msk.bf16.mxu1 %vm1169_vm0, %v1168_v0  ;;  %v85_v5 = vpack.c.bf16 %v84_v3, %v84_v3  ;;  %v981_v6 = vld [vmem:[#allocation7 + $0x8] sm:$0xff]   ;;  %v983_v8 = vld [vmem:[#allocation7 + $0x18] sm:$0xff]   ;;  %v984_v9 = vld [vmem:[#allocation7 + $0x20] sm:$0xff]   ;;  %s735_s18 = sshll.u32 %s1170_s17, 4  ;;  %s736_s18 = int_to_ptr.vmem [resolvable:$true] %s735_s18 }
  0x4d   :  { %861 = vmatpush3.bf16.msra.mxu0 %v978_v1  ;;  %869 = vmatpush3.bf16.msra.mxu1 %v980_v4  ;;  %v985_v10 = vld [vmem:[#allocation7 + $0x28] sm:$0xff]   ;;  %v986_v11 = vld [vmem:[#allocation7 + $0x30] sm:$0xff]   ;;  %v987_v12 = vld [vmem:[#allocation7 + $0x38] sm:$0xff]   ;;  %s1108_s19 = scalar_lea.vmem %s736_s18, 64  ;;  %p1113_p5 = scmp.lt.s32.totalorder %s736_s18, %s736_s18 }
  0x4e   :  { %862 = vmatprep.subr.bf16.mxu0 %v1168_v0  ;;  %870 = vmatprep.subr.bf16.mxu1 %v1168_v0  ;;  %v988_v13 = vld [vmem:[#allocation7 + $0x40] sm:$0xff]   ;;  %v989_v14 = vld [vmem:[#allocation7 + $0x48] sm:$0xff]   ;;  %v990_v15 = vld [vmem:[#allocation7 + $0x50] sm:$0xff]   ;;  %p1109_p4 = scmp.ne.s32.totalorder %s736_s18, %s1108_s19  ;;  %p1114_p6 = scmp.lt.s32.totalorder %s1108_s19, %s1108_s19 }
  0x4f   :  { %v991_v16 = vld [vmem:[#allocation7 + $0x58] sm:$0xff]   ;;  %v992_v17 = vld [vmem:[#allocation7 + $0x60] sm:$0xff]   ;;  %v993_v18 = vld [vmem:[#allocation7 + $0x68] sm:$0xff]  }
  0x50   :  { %v760_v19 = vld [vmem:[%s1376_s2] ss:$0 sm:$0xff]  ;;  %v994_v27 = vld [vmem:[#allocation7 + $0x70] sm:$0xff]   ;;  %v995_v28 = vld [vmem:[#allocation7 + $0x78] sm:$0xff]   ;;  %p1115_p7 = por %p1114_p6, %p1113_p5 }
  0x51   :  { %863 = vmatpush3.bf16.msra.mxu0 %v979_v2  ;;  %871 = vmatpush3.bf16.msra.mxu1 %v981_v6  ;;  %v996_v29 = vld [vmem:[#allocation7 + $0x80] sm:$0xff]   ;;  %v997_v30 = vld [vmem:[#allocation7 + $0x88] sm:$0xff]   ;;  %v998_v31 = vld [vmem:[#allocation7 + $0x90] sm:$0xff]  }
  0x52   :  { %888 = vmatprep.subr.bf16.mxu0 %v1168_v0  ;;  %872 = vmatprep.subr.bf16.mxu1 %v1168_v0  ;;  %v999_v32 = vld [vmem:[#allocation7 + $0x98] sm:$0xff]   ;;  %v1000_v33 = vld [vmem:[#allocation7 + $0xa0] sm:$0xff]   ;;  %v1001_v34 = vld [vmem:[#allocation7 + $0xa8] sm:$0xff]   ;;  %p1116_p8 = pnand %p1115_p7, %p1109_p4 }
  0x53   :  { %v764_v35 = vld [vmem:[%s1378_s4] ss:$0 sm:$0xff]  ;;  %v1002_v43 = vld [vmem:[#allocation7 + $0xb0] sm:$0xff]   ;;  %v1003_v44 = vld [vmem:[#allocation7 + $0xb8] sm:$0xff]  }
  0x54   :  { %865 = vmatmul.mubr.msk.bf16.vlgmr.msra.gmra.mrb[0].mxu0 %vm109_vm1, %v85_v5  ;;  %v1004_v45 = vld [vmem:[#allocation7 + $0xc0] sm:$0xff]   ;;  %v1005_v46 = vld [vmem:[#allocation7 + $0xc8] sm:$0xff]   ;;  %v1006_v47 = vld [vmem:[#allocation7 + $0xd0] sm:$0xff]  }
  0x55   :  { %904 = vmatprep.mubr.msk.bf16.mxu0 %vm1169_vm0, %v1168_v0  ;;  %873 = vmatpush3.bf16.msra.mxu1 %v982_v7  ;;  %v1007_v48 = vld [vmem:[#allocation7 + $0xd8] sm:$0xff]   ;;  %v1008_v49 = vld [vmem:[#allocation7 + $0xe0] sm:$0xff]   ;;  %v1009_v50 = vld [vmem:[#allocation7 + $0xe8] sm:$0xff]  }
  0x56   :  { %874 = vmatprep.subr.bf16.mxu1 %v1168_v0  ;;  %889 = vmatpush3.bf16.msra.mxu0 %v988_v13  ;;  %v774_v51 = vld [vmem:[%s1378_s4 + $0x1] ss:$0 sm:$0xff]  ;;  %v1010_v60 = vld [vmem:[#allocation7 + $0xf0] sm:$0xff]   ;;  %v1011_v61 = vld [vmem:[#allocation7 + $0xf8] sm:$0xff]  }
  0x57   :  { %890 = vmatprep.subr.bf16.mxu0 %v1168_v0  ;;  %v1012_v62 = vld [vmem:[#allocation8] sm:$0xff]   ;;  %v1013_v63 = vld [vmem:[#allocation8 + $0x8] sm:$0xff]   ;;  %v1014_v1 = vld [vmem:[#allocation8 + $0x10] sm:$0xff]  }
  0x58   :  { %v1015_v2 = vld [vmem:[#allocation8 + $0x18] sm:$0xff]   ;;  %v1016_v3 = vld [vmem:[#allocation8 + $0x20] sm:$0xff]   ;;  %v1017_v4 = vld [vmem:[#allocation8 + $0x28] sm:$0xff]  }
  0x59   :  { %875 = vmatpush3.bf16.msra.mxu1 %v983_v8  ;;  %v784_v5 = vld [vmem:[%s1378_s4 + $0x2] ss:$0 sm:$0xff]  ;;  %v1018_v13 = vld [vmem:[#allocation8 + $0x30] sm:$0xff]  }
  0x5a   :  { %876 = vmatprep.subr.bf16.mxu1 %v1168_v0  ;;  %891 = vmatpush3.bf16.msra.mxu0 %v989_v14  ;;  %v1019_v14 = vld [vmem:[#allocation8 + $0x38] sm:$0xff]  }
  0x5b   :  { %892 = vmatprep.subr.bf16.mxu0 %v1168_v0 }
  0x5d   :  { %877 = vmatpush3.bf16.msra.mxu1 %v984_v9 }
  0x5e   :  { %878 = vmatprep.subr.bf16.mxu1 %v1168_v0  ;;  %893 = vmatpush3.bf16.msra.mxu0 %v990_v15  ;;  %v794_v15 = vld [vmem:[%s1378_s4 + $0x3] ss:$0 sm:$0xff] }
  0x5f   :  { %894 = vmatprep.subr.bf16.mxu0 %v1168_v0 }
  0x61   :  { %879 = vmatpush3.bf16.msra.mxu1 %v985_v10 }
  0x62   :  { %880 = vmatprep.subr.bf16.mxu1 %v1168_v0  ;;  %895 = vmatpush3.bf16.msra.mxu0 %v991_v16 }
  0x63   :  { %896 = vmatprep.subr.bf16.mxu0 %v1168_v0 }
  0x65   :  { %881 = vmatpush3.bf16.msra.mxu1 %v986_v11 }
  0x66   :  { %882 = vmatprep.subr.bf16.mxu1 %v1168_v0  ;;  %897 = vmatpush3.bf16.msra.mxu0 %v992_v17 }
  0x67   :  { %898 = vmatprep.subr.bf16.mxu0 %v1168_v0 }
  0x69   :  { %883 = vmatpush3.bf16.msra.mxu1 %v987_v12 }
  0x6a   :  { %908 = vmatprep.subr.bf16.mxu1 %v1168_v0  ;;  %899 = vmatpush3.bf16.msra.mxu0 %v993_v18 }
  0x6b   :  { %900 = vmatprep.subr.bf16.mxu0 %v1168_v0 }
  0x6e   :  { %901 = vmatpush3.bf16.msra.mxu0 %v994_v27 }
  0x6f   :  { %902 = vmatprep.subr.bf16.mxu0 %v1168_v0 }
  0x72   :  { %903 = vmatpush3.bf16.msra.mxu0 %v995_v28 }
  0x73   :  { %928 = vmatprep.subr.bf16.mxu0 %v1168_v0 }
 0x127   :  { %v147_v20 = vpop.f32.mrb[0].mxu0 }
 0x128   :  { %v148_v21 = vadd.f32 %v760_v19, %v147_v20  ;;  %v866_v22 = vpop.f32.mrb[1].mxu0 }
 0x129   :  { %v150_v23 = vpop.f32.mrb[2].mxu0 }
 0x12a   :  { %v153_v24 = vmax.f32 %v148_v21, 0.0  ;;  %v867_v25 = vpop.f32.mrb[3].mxu0 }
 0x12c   :  { %v1301_v26 = vpack.c.bf16 %v153_v24, %v153_v24 }
 0x12e   :  { %885 = vmatmul.mubr.bf16.vlgmr.msra.gmra.mrb[0].mxu1 %v1301_v26 }
 0x12f   :  { %924 = vmatprep.mubr.msk.bf16.mxu1 %vm1169_vm0, %v1168_v0  ;;  %909 = vmatpush3.bf16.msra.mxu1 %v996_v29 }
 0x130   :  { %910 = vmatprep.subr.bf16.mxu1 %v1168_v0 }
 0x133   :  { %911 = vmatpush3.bf16.msra.mxu1 %v997_v30 }
 0x134   :  { %912 = vmatprep.subr.bf16.mxu1 %v1168_v0 }
 0x137   :  { %913 = vmatpush3.bf16.msra.mxu1 %v998_v31 }
 0x138   :  { %914 = vmatprep.subr.bf16.mxu1 %v1168_v0 }
 0x13b   :  { %915 = vmatpush3.bf16.msra.mxu1 %v999_v32 }
 0x13c   :  { %916 = vmatprep.subr.bf16.mxu1 %v1168_v0 }
 0x13f   :  { %917 = vmatpush3.bf16.msra.mxu1 %v1000_v33 }
 0x140   :  { %918 = vmatprep.subr.bf16.mxu1 %v1168_v0 }
 0x143   :  { %919 = vmatpush3.bf16.msra.mxu1 %v1001_v34 }
 0x144   :  { %920 = vmatprep.subr.bf16.mxu1 %v1168_v0 }
 0x147   :  { %921 = vmatpush3.bf16.msra.mxu1 %v1002_v43 }
 0x148   :  { %922 = vmatprep.subr.bf16.mxu1 %v1168_v0 }
 0x14b   :  { %923 = vmatpush3.bf16.msra.mxu1 %v1003_v44 }
 0x14c   :  { %948 = vmatprep.subr.bf16.mxu1 %v1168_v0 }
 0x201   :  { %v260_v36 = vpop.f32.mrb[0].mxu1 }
 0x202   :  { %v261_v37 = vadd.f32 %v764_v35, %v260_v36  ;;  %v886_v38 = vpop.f32.mrb[1].mxu1 }
 0x203   :  { %v263_v39 = vpop.f32.mrb[2].mxu1 }
 0x204   :  { %v266_v40 = vmax.f32 %v261_v37, 0.0  ;;  %v887_v41 = vpop.f32.mrb[3].mxu1 }
 0x206   :  { %v267_v42 = vpack.c.bf16 %v266_v40, %v266_v40 }
 0x208   :  { %905 = vmatmul.mubr.bf16.vlgmr.msra.gmra.mrb[4].mxu0 %v267_v42 }
 0x209   :  { %944 = vmatprep.mubr.msk.bf16.mxu0 %vm1169_vm0, %v1168_v0  ;;  %929 = vmatpush3.bf16.msra.mxu0 %v1004_v45 }
 0x20a   :  { %930 = vmatprep.subr.bf16.mxu0 %v1168_v0 }
 0x20d   :  { %931 = vmatpush3.bf16.msra.mxu0 %v1005_v46 }
 0x20e   :  { %932 = vmatprep.subr.bf16.mxu0 %v1168_v0 }
 0x211   :  { %933 = vmatpush3.bf16.msra.mxu0 %v1006_v47 }
 0x212   :  { %934 = vmatprep.subr.bf16.mxu0 %v1168_v0 }
 0x215   :  { %935 = vmatpush3.bf16.msra.mxu0 %v1007_v48 }
 0x216   :  { %936 = vmatprep.subr.bf16.mxu0 %v1168_v0 }
 0x219   :  { %937 = vmatpush3.bf16.msra.mxu0 %v1008_v49 }
 0x21a   :  { %938 = vmatprep.subr.bf16.mxu0 %v1168_v0 }
 0x21d   :  { %939 = vmatpush3.bf16.msra.mxu0 %v1009_v50 }
 0x21e   :  { %940 = vmatprep.subr.bf16.mxu0 %v1168_v0 }
 0x221   :  { %941 = vmatpush3.bf16.msra.mxu0 %v1010_v60 }
 0x222   :  { %942 = vmatprep.subr.bf16.mxu0 %v1168_v0 }
 0x225   :  { %943 = vmatpush3.bf16.msra.mxu0 %v1011_v61 }
 0x2db   :  { %v375_v52 = vpop.f32.mrb[4].mxu0 }
 0x2dc   :  { %v376_v53 = vadd.f32 %v774_v51, %v375_v52  ;;  %v906_v54 = vpop.f32.mrb[5].mxu0 }
 0x2dd   :  { %v378_v55 = vpop.f32.mrb[6].mxu0 }
 0x2de   :  { %v381_v56 = vmax.f32 %v376_v53, 0.0  ;;  %v907_v57 = vpop.f32.mrb[7].mxu0 }
 0x2e0   :  { %v382_v58 = vpack.c.bf16 %v381_v56, %v381_v56 }
 0x2e2   :  { %v383_v59 = vadd.bf16 %v382_v58, %v1301_v26 }
 0x2e4   :  { %925 = vmatmul.mubr.bf16.vlgmr.msra.gmra.mrb[4].mxu1 %v383_v59 }
 0x2e5   :  { %964 = vmatprep.mubr.msk.bf16.mxu1 %vm1169_vm0, %v1168_v0  ;;  %949 = vmatpush3.bf16.msra.mxu1 %v1012_v62 }
 0x2e6   :  { %950 = vmatprep.subr.bf16.mxu1 %v1168_v0 }
 0x2e9   :  { %951 = vmatpush3.bf16.msra.mxu1 %v1013_v63 }
 0x2ea   :  { %952 = vmatprep.subr.bf16.mxu1 %v1168_v0 }
 0x2ed   :  { %953 = vmatpush3.bf16.msra.mxu1 %v1014_v1 }
 0x2ee   :  { %954 = vmatprep.subr.bf16.mxu1 %v1168_v0 }
 0x2f1   :  { %955 = vmatpush3.bf16.msra.mxu1 %v1015_v2 }
 0x2f2   :  { %956 = vmatprep.subr.bf16.mxu1 %v1168_v0 }
 0x2f5   :  { %957 = vmatpush3.bf16.msra.mxu1 %v1016_v3 }
 0x2f6   :  { %958 = vmatprep.subr.bf16.mxu1 %v1168_v0 }
 0x2f9   :  { %959 = vmatpush3.bf16.msra.mxu1 %v1017_v4 }
 0x2fa   :  { %960 = vmatprep.subr.bf16.mxu1 %v1168_v0 }
 0x2fd   :  { %961 = vmatpush3.bf16.msra.mxu1 %v1018_v13 }
 0x2fe   :  { %962 = vmatprep.subr.bf16.mxu1 %v1168_v0 }
 0x301   :  { %963 = vmatpush3.bf16.msra.mxu1 %v1019_v14 }
 0x3b7   :  { %v491_v6 = vpop.f32.mrb[4].mxu1 }
 0x3b8   :  { %v492_v7 = vadd.f32 %v784_v5, %v491_v6  ;;  %v926_v8 = vpop.f32.mrb[5].mxu1 }
 0x3b9   :  { %v494_v9 = vpop.f32.mrb[6].mxu1 }
 0x3ba   :  { %v497_v10 = vmax.f32 %v492_v7, 0.0  ;;  %v927_v11 = vpop.f32.mrb[7].mxu1 }
 0x3bc   :  { %v498_v12 = vpack.c.bf16 %v497_v10, %v497_v10 }
 0x3be   :  { %945 = vmatmul.mubr.bf16.vlgmr.msra.gmra.mrb[8].mxu0 %v498_v12 }
 0x491   :  { %v606_v16 = vpop.f32.mrb[8].mxu0 }
 0x492   :  { %v607_v17 = vadd.f32 %v794_v15, %v606_v16  ;;  %v946_v18 = vpop.f32.mrb[9].mxu0 }
 0x493   :  { %v609_v19 = vpop.f32.mrb[10].mxu0 }
 0x494   :  { %v612_v20 = vmax.f32 %v607_v17, 0.0  ;;  %v947_v21 = vpop.f32.mrb[11].mxu0 }
 0x496   :  { %v613_v22 = vpack.c.bf16 %v612_v20, %v612_v20 }
 0x498   :  { %v614_v23 = vadd.bf16 %v613_v22, %v383_v59 }
 0x49a   :  { %615 = vst [vmem:[#allocation10] sm:$0xf] %v614_v23  ;;  %965 = vmatmul.mubr.bf16.vlgmr.msra.gmra.mrb[8].mxu1 %v614_v23 }
 0x49b   :  { %1119 = shalt.err (!%p1116_p8)
}
 0x49c   :  { %s1120_s20 = scalar_lea.hbm %s1381_s7, 64 }
 0x49d   :  { %p1121_p9 = scmp.ne.s32.totalorder %s1381_s7, %s1120_s20  ;;  %p1124_p10 = scmp.lt.u32.totalorder %s1120_s20, %s1381_s7 }
 0x49f   :  { %p1126_p11 = pnand %p1124_p10, %p1121_p9 }
 0x4a1   :  { %1129 = shalt.err (!%p1126_p11)
}
 0x4a2   :  { %738 = dma.vmem_to_hbm [thread:$0]  %s736_s18, 64, %s1381_s7, [#allocation4]   ;;  %v803_v0 = vld [vmem:[%s1380_s6] ss:$0 sm:$0xff] }
 0x4a3   :  { %s1171_s1 = smov [#allocation11]  }
 0x4a4   :  { %s745_s28 = sshll.u32 %s1171_s1, 4  ;;  %s746_s28 = int_to_ptr.vmem [resolvable:$true] %s745_s28 }
 0x4a5   :  { %s1130_s3 = scalar_lea.vmem %s746_s28, 64  ;;  %p1135_p13 = scmp.lt.s32.totalorder %s746_s28, %s746_s28 }
 0x4a6   :  { %p1131_p12 = scmp.ne.s32.totalorder %s746_s28, %s1130_s3  ;;  %p1136_p0 = scmp.lt.s32.totalorder %s1130_s3, %s1130_s3 }
 0x4a8   :  { %p1137_p1 = por %p1136_p0, %p1135_p13 }
 0x4aa   :  { %p1138_p2 = pnand %p1137_p1, %p1131_p12 }
 0x56d   :  { %v721_v24 = vpop.f32.mrb[8].mxu1 }
 0x56e   :  { %v722_v25 = vadd.f32 %v803_v0, %v721_v24  ;;  %v966_v26 = vpop.f32.mrb[9].mxu1 }
 0x56f   :  { %v724_v27 = vpop.f32.mrb[10].mxu1 }
 0x570   :  { %v727_v28 = vpack.c.bf16 %v722_v25, %v722_v25  ;;  %v967_v29 = vpop.f32.mrb[11].mxu1 }
 0x572   :  { %728 = vst [vmem:[#allocation11] sm:$0xf] %v727_v28 }
 0x573   :  { %1141 = shalt.err (!%p1138_p2)
}
 0x574   :  { %s1142_s6 = scalar_lea.hbm %s1382_s8, 64 }
 0x575   :  { %p1143_p3 = scmp.ne.s32.totalorder %s1382_s8, %s1142_s6  ;;  %p1146_p4 = scmp.lt.u32.totalorder %s1142_s6, %s1382_s8 }
 0x577   :  { %p1148_p5 = pnand %p1146_p4, %p1143_p3 }
 0x579   :  { %1151 = shalt.err (!%p1148_p5)
}
 0x57a   :  { %748 = dma.vmem_to_hbm [thread:$0]  %s746_s28, 64, %s1382_s8, [#allocation12]  }
 0x57b   :  { %1158 = dma.done.wait [#allocation4], 64  }
 0x57c   :  { %1159 = vsyncadd [#allocation4], 4294967232 }
 0x57d   :  { %1160 = dma.done.wait [#allocation12], 64  }
 0x57e   :  { %1161 = vsyncadd [#allocation12], 4294967232 }
 0x57f   :  { %755 = vsyncpa [#allocation3], 1 }
 0x580   :  { %756 = vsyncpa [#allocation6], 1 }
 0x581   :  { %757 = vsyncpa [#allocation9], 1 }
 0x582   :  { %758 = vsyncpa [#allocation4], 1 }
 0x583   :  { %759 = vsyncpa [#allocation12], 1 }

</bundles_post_ra>
